<compile_context>
chip_gen: v6e
topology: v6e:2x2x1
jax: 0.10.0
libtpu: 0.0.40
codegen_flags: <defaults>
</compile_context>

<pallas_src>
from functools import partial

import numpy as np
import jax
import jax.numpy as jnp
from jax.experimental import pallas as pl
from jax.experimental.pallas import tpu as pltpu


# ------------------------------ Pallas kernel --------------------------------

def convblock_kernel(p_ref, w_ref, b_ref, o_ref, act_ref, *,
                     Hc, Wc, Hp, Wp, kp, sp, off_h, off_w,
                     nonlinear, neg_slope):
    """Fused Conv2d (im2col matmul) + activation + MaxPool2d for ONE image.

    p_ref  : (1, Hc*Wc, CKK) bf16 im2col patches; conv positions are ordered
             phase-major along both spatial axes (see wrapper).
    w_ref  : (CKK, O)  bf16 conv weight, (c, kh, kw)-flattened and transposed.
    b_ref  : (1, O)    f32 conv bias.
    o_ref  : (1, Hp, Wp, O) f32 pooled output in natural (i, j) order.
    act_ref: (Hc, Wc, O) f32 VMEM scratch holding the activated conv output.
    """
    n_out = o_ref.shape[-1]

    # Conv2d == one dense MXU matmul (bf16 operands, f32 accumulation) + bias.
    conv = jnp.dot(p_ref[0], w_ref[...], preferred_element_type=jnp.float32)
    conv = conv + b_ref[...]

    # Activation (static choice at trace time), all math in f32.
    if nonlinear == 'relu':
        act = jnp.maximum(conv, 0.0)
    elif nonlinear == 'leaky':
        act = jnp.where(conv >= 0.0, conv, neg_slope * conv)
    elif nonlinear == 'soft':
        # nn.Softmax(dim=1) == softmax over channels == last axis here.
        m = jnp.max(conv, axis=-1, keepdims=True)
        e = jnp.exp(conv - m)
        s = jnp.sum(e, axis=-1, keepdims=True)
        act = e * pl.reciprocal(s, approx=True)
    else:
        raise ValueError(f"unknown nonlinearity: {nonlinear}")

    # Stage the activated conv output in VMEM scratch as (Hc, Wc, O).
    # (Wc is kept sublane-friendly by the wrapper's toy shapes; at worst this
    #  reshape is a local VMEM relayout, never an HBM round-trip.)
    act_ref[...] = act.reshape(Hc, Wc, n_out)

    # Separable MaxPool2d over kp x kp windows with stride sp.  Thanks to the
    # phase-major ordering every window offset is a STATIC CONTIGUOUS slice:
    # offset d -> phase r = d % sp, shift m = d // sp.
    wpool = None
    for dw in range(kp):
        c0 = off_w[dw % sp] + dw // sp
        t = act_ref[:, c0:c0 + Wp, :]                 # (Hc, Wp, O)
        wpool = t if wpool is None else jnp.maximum(wpool, t)

    pooled = None
    for dh in range(kp):
        r0 = off_h[dh % sp] + dh // sp
        t = wpool[r0:r0 + Hp, :, :]                   # (Hp, Wp, O)
        pooled = t if pooled is None else jnp.maximum(pooled, t)

    o_ref[0] = pooled.astype(o_ref.dtype)


# ------------------------------ Python wrapper --------------------------------

def conv_block_forward(x, w, b, *, ksp, nonlinear, ks_pool=(3, 2)):
    """ConvBlock forward: Conv2d(ksp) -> nonlinearity -> MaxPool2d(ks_pool).

    x: (B, C, H, W) NCHW, w: (O, C, K, K), b: (O,).  Returns (B, O, Hp, Wp).
    """
    B, C, H, W = x.shape
    O = w.shape[0]
    K, s_c, pad = ksp
    kp, sp = ks_pool

    Hc = (H + 2 * pad - K) // s_c + 1
    Wc = (W + 2 * pad - K) // s_c + 1
    Hp = (Hc - kp) // sp + 1
    Wp = (Wc - kp) // sp + 1
    CKK = C * K * K

    # Phase-major ordering of conv output positions (a pure permutation: it adds
    # zero bytes and is folded into the im2col index arrays).  It turns the
    # in-kernel stride-sp pooling into static contiguous slices.
    ord_h = np.concatenate([np.arange(r, Hc, sp) for r in range(sp)])
    ord_w = np.concatenate([np.arange(r, Wc, sp) for r in range(sp)])
    sizes_h = [len(range(r, Hc, sp)) for r in range(sp)]
    sizes_w = [len(range(r, Wc, sp)) for r in range(sp)]
    off_h = tuple(int(v) for v in np.cumsum([0] + sizes_h[:-1]))
    off_w = tuple(int(v) for v in np.cumsum([0] + sizes_w[:-1]))

    # im2col: ONE row per conv output position (no kp^2 pool replication).
    # TODO(synk): this ~K^2 HBM expansion could be removed entirely with an
    # in-kernel shifted-matmul formulation.
    x_pad = jnp.pad(x, ((0, 0), (0, 0), (pad, pad), (pad, pad)))
    ih = (ord_h * s_c)[:, None] + np.arange(K)[None, :]               # (Hc, K)
    iw = (ord_w * s_c)[:, None] + np.arange(K)[None, :]               # (Wc, K)
    p6 = x_pad[:, :, ih[:, :, None, None], iw[None, None, :, :]]      # (B,C,Hc,K,Wc,K)
    patches = p6.transpose(0, 2, 4, 1, 3, 5).reshape(B, Hc * Wc, CKK)

    # bf16 matmul operands; f32 accumulation + f32 bias inside the kernel.
    patches = patches.astype(jnp.bfloat16)
    w_mat = w.reshape(O, CKK).T.astype(jnp.bfloat16)                  # (CKK, O)
    b_mat = b.reshape(1, O).astype(jnp.float32)

    # VMEM budget: 2 buffers per streamed operand + resident weight/bias + scratch.
    # Sized with headroom but clamped so it is also safe on v7x (64 MiB physical).
    vmem_need = (2 * Hc * Wc * CKK * 2        # double-buffered patch tile (bf16)
                 + 2 * Hp * Wp * O * 4        # double-buffered output tile (f32)
                 + CKK * O * 2 + O * 4        # resident weight + bias
                 + Hc * Wc * O * 4)           # activation scratch
    vmem_limit = int(min(max(4 * vmem_need, 8 * 1024 * 1024), 48 * 1024 * 1024))

    flops = 2 * B * Hc * Wc * CKK * O
    transcendentals = B * Hc * Wc * (O + 1) if nonlinear == 'soft' else 0
    bytes_accessed = (patches.size * 2 + w_mat.size * 2 + b_mat.size * 4
                      + B * Hp * Wp * O * 4)

    kernel = partial(convblock_kernel, Hc=Hc, Wc=Wc, Hp=Hp, Wp=Wp,
                     kp=kp, sp=sp, off_h=off_h, off_w=off_w,
                     nonlinear=nonlinear, neg_slope=0.01)

    out = pl.pallas_call(
        kernel,
        out_shape=jax.ShapeDtypeStruct((B, Hp, Wp, O), jnp.float32),
        grid_spec=pltpu.PrefetchScalarGridSpec(
            num_scalar_prefetch=0,
            grid=(B,),
            in_specs=[
                pl.BlockSpec((1, Hc * Wc, CKK), lambda bi: (bi, 0, 0)),
                pl.BlockSpec((CKK, O), lambda bi: (0, 0)),   # resident weight
                pl.BlockSpec((1, O), lambda bi: (0, 0)),     # resident bias
            ],
            out_specs=pl.BlockSpec((1, Hp, Wp, O), lambda bi: (bi, 0, 0, 0)),
            scratch_shapes=[pltpu.VMEM((Hc, Wc, O), jnp.float32)],
        ),
        compiler_params=pltpu.CompilerParams(
            dimension_semantics=("parallel",),
            vmem_limit_bytes=vmem_limit),
        cost_estimate=pl.CostEstimate(flops=flops,
                                      transcendentals=transcendentals,
                                      bytes_accessed=bytes_accessed),
    )(patches, w_mat, b_mat)

    # Pooled NHWC -> NCHW to match the PyTorch module's output layout.
    return out.transpose(0, 3, 1, 2)


# --------------------------- pure-JAX reference -------------------------------

def conv_block_reference(x, w, b, *, ksp, nonlinear, ks_pool=(3, 2)):
    K, s_c, pad = ksp
    kp, sp = ks_pool
    conv = jax.lax.conv_general_dilated(
        x, w, window_strides=(s_c, s_c), padding=[(pad, pad), (pad, pad)],
        dimension_numbers=('NCHW', 'OIHW', 'NCHW')) + b.reshape(1, -1, 1, 1)
    if nonlinear == 'relu':
        act = jnp.maximum(conv, 0.0)
    elif nonlinear == 'leaky':
        act = jnp.where(conv >= 0.0, conv, 0.01 * conv)
    else:  # 'soft'
        act = jax.nn.softmax(conv, axis=1)
    return jax.lax.reduce_window(act, -jnp.inf, jax.lax.max,
                                 (1, 1, kp, kp), (1, 1, sp, sp), 'VALID')


# ----------------------------------- main --------------------------------------

if __name__ == "__main__":
    B, C, H, W = 2, 4, 16, 16
    O = 8
    ksp = (3, 1, 1)          # Conv2d kernel=3, stride=1, padding=1
    ks_pool = (3, 2)         # MaxPool2d kernel=3, stride=2

    key = jax.random.PRNGKey(0)
    kx, kw, kb = jax.random.split(key, 3)
    x = jax.random.normal(kx, (B, C, H, W), jnp.float32)
    w = 0.1 * jax.random.normal(kw, (O, C, ksp[0], ksp[0]), jnp.float32)
    b = 0.1 * jax.random.normal(kb, (O,), jnp.float32)

    Hc = (H + 2 * ksp[2] - ksp[0]) // ksp[1] + 1
    Hp = (Hc - ks_pool[0]) // ks_pool[1] + 1

    for nonlinear in ('relu', 'leaky', 'soft'):
        y = jax.block_until_ready(
            conv_block_forward(x, w, b, ksp=ksp, nonlinear=nonlinear,
                               ks_pool=ks_pool))
        ref = jax.block_until_ready(
            conv_block_reference(x, w, b, ksp=ksp, nonlinear=nonlinear,
                                 ks_pool=ks_pool))
        assert y.shape == (B, O, Hp, Hp), y.shape
        # bf16 matmul operands + approx reciprocal -> relaxed tolerance.
        assert np.allclose(np.asarray(y), np.asarray(ref),
                           rtol=3e-2, atol=3e-2), \
            f"mismatch for nonlinearity '{nonlinear}'"

    print("KERNEL_OK")
</pallas_src>

<mosaic_0001>
module attributes {stable_mosaic.version = 11 : i64} {
  func.func @convblock_kernel(%arg0: i32, %arg1: memref<1x256x36xbf16, #tpu.memory_space<vmem>>, %arg2: memref<36x8xbf16, #tpu.memory_space<vmem>>, %arg3: memref<1x8xf32, #tpu.memory_space<vmem>>, %arg4: memref<1x7x7x8xf32, #tpu.memory_space<vmem>>, %arg5: memref<16x16x8xf32, #tpu.memory_space<vmem>>) attributes {dimension_semantics = [#tpu.dimension_semantics<parallel>], iteration_bounds = array<i64: 2>, scalar_prefetch = 0 : i64, scratch_operands = 1 : i64, tpu.core_type = #tpu.core_type<tc>, window_params = [{transform_indices = @transform_0, window_bounds = array<i64: 1, 256, 36>}, {pipeline_mode = #tpu.pipeline_mode<synchronous>, transform_indices = @transform_1, window_bounds = array<i64: 36, 8>}, {pipeline_mode = #tpu.pipeline_mode<synchronous>, transform_indices = @transform_2, window_bounds = array<i64: 1, 8>}, {transform_indices = @transform_3, window_bounds = array<i64: 1, 7, 7, 8>}]} {
    %c0 = arith.constant 0 : index
    %c0_0 = arith.constant 0 : index
    %c0_1 = arith.constant 0 : index
    %0 = vector.load %arg1[%c0, %c0_0, %c0_1] : memref<1x256x36xbf16, #tpu.memory_space<vmem>>, vector<1x256x36xbf16>
    %1 = vector.shape_cast %0 : vector<1x256x36xbf16> to vector<256x36xbf16>
    %c0_2 = arith.constant 0 : index
    %c0_3 = arith.constant 0 : index
    %2 = vector.load %arg2[%c0_2, %c0_3] : memref<36x8xbf16, #tpu.memory_space<vmem>>, vector<36x8xbf16>
    %cst = arith.constant dense<0.000000e+00> : vector<256x8xf32>
    %3 = tpu.matmul %1, %2, %cst {dimension_numbers = #tpu.dot_dimension_numbers<[1], [0], [0], [1], [0, 0, 1, 1], [], []>} : vector<256x36xbf16>, vector<36x8xbf16>, vector<256x8xf32> -> vector<256x8xf32>
    %c0_4 = arith.constant 0 : index
    %c0_5 = arith.constant 0 : index
    %4 = vector.load %arg3[%c0_4, %c0_5] : memref<1x8xf32, #tpu.memory_space<vmem>>, vector<1x8xf32>
    %5 = vector.broadcast %4 : vector<1x8xf32> to vector<256x8xf32>
    %6 = arith.addf %3, %5 : vector<256x8xf32>
    %cst_6 = arith.constant 0.000000e+00 : f32
    %7 = vector.broadcast %cst_6 : f32 to vector<256x8xf32>
    %8 = arith.maximumf %6, %7 : vector<256x8xf32>
    %9 = vector.shape_cast %8 : vector<256x8xf32> to vector<16x16x8xf32>
    %c0_7 = arith.constant 0 : index
    %c0_8 = arith.constant 0 : index
    %c0_9 = arith.constant 0 : index
    %10 = vector.load %arg5[%c0_7, %c0_8, %c0_9] : memref<16x16x8xf32, #tpu.memory_space<vmem>>, vector<16x16x8xf32>
    tpu.vector_store %arg5[%c0_7, %c0_8, %c0_9], %9 {strides = array<i32>} : memref<16x16x8xf32, #tpu.memory_space<vmem>>, vector<16x16x8xf32>,
    %c0_10 = arith.constant 0 : index
    %c0_11 = arith.constant 0 : index
    %c0_12 = arith.constant 0 : index
    %11 = vector.load %arg5[%c0_10, %c0_11, %c0_12] : memref<16x16x8xf32, #tpu.memory_space<vmem>>, vector<16x7x8xf32>
    %c0_13 = arith.constant 0 : index
    %c8 = arith.constant 8 : index
    %c0_14 = arith.constant 0 : index
    %12 = vector.load %arg5[%c0_13, %c8, %c0_14] : memref<16x16x8xf32, #tpu.memory_space<vmem>>, vector<16x7x8xf32>
    %13 = arith.maximumf %11, %12 : vector<16x7x8xf32>
    %c0_15 = arith.constant 0 : index
    %c1 = arith.constant 1 : index
    %c0_16 = arith.constant 0 : index
    %14 = vector.load %arg5[%c0_15, %c1, %c0_16] : memref<16x16x8xf32, #tpu.memory_space<vmem>>, vector<16x7x8xf32>
    %15 = arith.maximumf %13, %14 : vector<16x7x8xf32>
    %16 = vector.extract_strided_slice %15 {offsets = [0, 0, 0], sizes = [7, 7, 8], strides = [1, 1, 1]} : vector<16x7x8xf32> to vector<7x7x8xf32>
    %17 = vector.extract_strided_slice %15 {offsets = [8, 0, 0], sizes = [7, 7, 8], strides = [1, 1, 1]} : vector<16x7x8xf32> to vector<7x7x8xf32>
    %18 = arith.maximumf %16, %17 : vector<7x7x8xf32>
    %19 = vector.extract_strided_slice %15 {offsets = [1, 0, 0], sizes = [7, 7, 8], strides = [1, 1, 1]} : vector<16x7x8xf32> to vector<7x7x8xf32>
    %20 = arith.maximumf %18, %19 : vector<7x7x8xf32>
    %c0_17 = arith.constant 0 : index
    %c0_18 = arith.constant 0 : index
    %c0_19 = arith.constant 0 : index
    %c0_20 = arith.constant 0 : index
    %21 = vector.load %arg4[%c0_17, %c0_18, %c0_19, %c0_20] : memref<1x7x7x8xf32, #tpu.memory_space<vmem>>, vector<1x7x7x8xf32>
    %22 = vector.shape_cast %21 : vector<1x7x7x8xf32> to vector<7x7x8xf32>
    %23 = vector.shape_cast %20 : vector<7x7x8xf32> to vector<1x7x7x8xf32>
    tpu.vector_store %arg4[%c0_17, %c0_18, %c0_19, %c0_20], %23 {strides = array<i32>} : memref<1x7x7x8xf32, #tpu.memory_space<vmem>>, vector<1x7x7x8xf32>,
    return
  }
  func.func @transform_0(%arg0: i32) -> (i32, i32, i32) {
    %c0_i32 = arith.constant 0 : i32
    %c0_i32_0 = arith.constant 0 : i32
    %c0_i32_1 = arith.constant 0 : i32
    return %arg0, %c0_i32, %c0_i32_0 : i32, i32, i32
  }
  func.func @transform_1(%arg0: i32) -> (i32, i32) {
    %c0_i32 = arith.constant 0 : i32
    %c0_i32_0 = arith.constant 0 : i32
    %c0_i32_1 = arith.constant 0 : i32
    return %c0_i32, %c0_i32_0 : i32, i32
  }
  func.func @transform_2(%arg0: i32) -> (i32, i32) {
    %c0_i32 = arith.constant 0 : i32
    %c0_i32_0 = arith.constant 0 : i32
    %c0_i32_1 = arith.constant 0 : i32
    return %c0_i32, %c0_i32_0 : i32, i32
  }
  func.func @transform_3(%arg0: i32) -> (i32, i32, i32, i32) {
    %c0_i32 = arith.constant 0 : i32
    %c0_i32_0 = arith.constant 0 : i32
    %c0_i32_1 = arith.constant 0 : i32
    %c0_i32_2 = arith.constant 0 : i32
    return %arg0, %c0_i32, %c0_i32_0, %c0_i32_1 : i32, i32, i32, i32
  }
}

</mosaic_0001>

<bundles_post_ra>
// kernel: tpu_custom_call.1
= control target key start
LH: loop header
LB: loop body
LE: loop exit
PB: predicated region body
PF: predicated region fallthrough
CT: control target
= control target key end

     0   :  { %s910_s12 = smov 0   ;;  %s1059_s0 = inlined_call_operand.vmem [shape: bf16[2,256,36], index: 0, kind: input, shape index: {}]   ;;  %s1060_s1 = inlined_call_operand.vmem [shape: bf16[36,8], index: 1, kind: input, shape index: {}]   ;;  %s1061_s2 = inlined_call_operand.vmem [shape: f32[1,8], index: 2, kind: input, shape index: {}]   ;;  %s1062_s3 = inlined_call_operand.vmem [shape: f32[2,7,7,8], index: 3, kind: output, shape index: {}]  }
   0x1 LB: > { %s742_s13 = sadd.s32 4294967295, %s888_s12   ;;  %p746_p0 = scmp.ge.s32.totalorder %s888_s12, 1  ;;  %s888_s12 = sphi %s910_s12, %s13_s12  }
   0x2   : > { %p137_p1 = scmp.lt.s32.totalorder %s888_s12, 3 }
   0x4   : > { %p138_p2 = pnand %p746_p0, %p137_p1 }
   0x5   : > { %p161_p3 = scmp.lt.s32.totalorder (!%p138_p2), %s742_s13, 1 }
   0x6   : > { %141 = sbr.rel (%p138_p2) target bundleno = 269 (0x10d), region = 32 }
   0xb   : > { %v863_v0 = vld [vmem:[%s1060_s1 + $0x10] ss:$0 sps:$4 sm:$0x33]   ;;  %vm360_vm0 = vcmask 1041408   ;;  %v864_v1 = vld [vmem:[%s1060_s1 + $0x8] sm:$0xff]   ;;  %s1064_s13 = smov (!%p161_p3, %s742_s13), 1 }
   0xc   : > { %852 = vmatprep.subr.msk.bf16.mxu0 %vm360_vm0, %v863_v0  ;;  %853 = vmatprep.subr.msk.bf16.mxu1 %vm360_vm0, %v863_v0  ;;  %v362_v2 = vsel %vm360_vm0, %v863_v0, 0  ;;  %v865_v3 = vld [vmem:[%s1060_s1] sm:$0xff]   ;;  %s788_s20 = sshll.u32 %s1064_s13, 7  ;;  %vm311_vm1 = vcmask 293888   ;;  %vm557_vm2 = vcmask 64512   ;;  %s854_s26 = smul.u32 56, %s1064_s13 }
   0xd   : > { %809 = vmatpush3.bf16.msra.mxu0 %v362_v2  ;;  %849 = vmatpush3.bf16.msra.mxu1 %v362_v2  ;;  %s933_s23 = scalar_lea.vmem %s1059_s0, %s788_s20  ;;  %v970_v20 = vld [vmem:[%s1061_s2] ss:$0 sm:$0xff]  ;;  %vm679_vm3 = vcmask 63488  }
   0xe   : > { %810 = vmatprep.subr.bf16.mxu0 %v864_v1  ;;  %847 = vmatprep.subr.bf16.mxu1 %v864_v1  ;;  %v866_v4 = vld [vmem:[%s933_s23] sm:$0xff]   ;;  %v868_v6 = vld [vmem:[%s933_s23 + $0x8] sm:$0xff]   ;;  %v870_v8 = vld [vmem:[%s933_s23 + $0x10] sm:$0xff]   ;;  %s1017_s29 = scalar_lea.vmem %s1062_s3, %s854_s26 }
   0xf   : > { %v867_v5 = vld [vmem:[%s933_s23 + $0x40] sm:$0xff]   ;;  %814 = vmatprep.mubr.msk.bf16.mxu0 %vm311_vm1, %v866_v4  ;;  %v869_v7 = vld [vmem:[%s933_s23 + $0x48] sm:$0xff]   ;;  %v871_v9 = vld [vmem:[%s933_s23 + $0x50] sm:$0xff]  }
  0x10   : > { %830 = vmatprep.mubr.msk.bf16.mxu1 %vm311_vm1, %v867_v5  ;;  %v872_v10 = vld [vmem:[%s933_s23 + $0x18] sm:$0xff]   ;;  %v874_v12 = vld [vmem:[%s933_s23 + $0x20] sm:$0xff]   ;;  %v876_v14 = vld [vmem:[%s933_s23 + $0x28] sm:$0xff]  }
  0x11   : > { %811 = vmatpush3.bf16.msra.mxu0 %v864_v1  ;;  %850 = vmatpush3.bf16.msra.mxu1 %v864_v1  ;;  %v873_v11 = vld [vmem:[%s933_s23 + $0x58] sm:$0xff]   ;;  %v875_v13 = vld [vmem:[%s933_s23 + $0x60] sm:$0xff]   ;;  %v877_v15 = vld [vmem:[%s933_s23 + $0x68] sm:$0xff]  }
  0x12   : > { %812 = vmatprep.subr.bf16.mxu0 %v865_v3  ;;  %848 = vmatprep.subr.bf16.mxu1 %v865_v3  ;;  %v878_v16 = vld [vmem:[%s933_s23 + $0x30] sm:$0xff]   ;;  %v880_v18 = vld [vmem:[%s933_s23 + $0x38] sm:$0xff]  }
  0x13   : > { %v879_v17 = vld [vmem:[%s933_s23 + $0x70] sm:$0xff]   ;;  %v881_v19 = vld [vmem:[%s933_s23 + $0x78] sm:$0xff]  }
  0x15   : > { %813 = vmatpush3.bf16.msra.mxu0 %v865_v3  ;;  %851 = vmatpush3.bf16.msra.mxu1 %v865_v3 }
  0x18   : > { %815 = vmatmul.mubr.msk.bf16.vlgmr.msra.gmra.mxu0 %vm311_vm1, %v868_v6  ;;  %831 = vmatmul.mubr.msk.bf16.vlgmr.msra.gmra.mxu1 %vm311_vm1, %v869_v7 }
  0x19   : > { %818 = vmatprep.mubr.msk.bf16.mxu0 %vm311_vm1, %v870_v8  ;;  %834 = vmatprep.mubr.msk.bf16.mxu1 %vm311_vm1, %v871_v9 }
  0x20   : > { %819 = vmatmul.mubr.msk.bf16.gmra.mxu0 %vm311_vm1, %v872_v10  ;;  %835 = vmatmul.mubr.msk.bf16.gmra.mxu1 %vm311_vm1, %v873_v11 }
  0x21   : > { %822 = vmatprep.mubr.msk.bf16.mxu0 %vm311_vm1, %v874_v12  ;;  %838 = vmatprep.mubr.msk.bf16.mxu1 %vm311_vm1, %v875_v13 }
  0x28   : > { %823 = vmatmul.mubr.msk.bf16.gmra.mxu0 %vm311_vm1, %v876_v14  ;;  %839 = vmatmul.mubr.msk.bf16.gmra.mxu1 %vm311_vm1, %v877_v15 }
  0x29   : > { %826 = vmatprep.mubr.msk.bf16.mxu0 %vm311_vm1, %v878_v16  ;;  %842 = vmatprep.mubr.msk.bf16.mxu1 %vm311_vm1, %v879_v17 }
  0x30   : > { %827 = vmatmul.mubr.msk.bf16.gmra.mxu0 %vm311_vm1, %v880_v18  ;;  %843 = vmatmul.mubr.msk.bf16.gmra.mxu1 %vm311_vm1, %v881_v19 }
  0xd8   : > { %v816_v21 = vpop.f32.mrf.mxu0  ;;  %v832_v22 = vpop.f32.mrf.mxu1 }
  0xd9   : > { %v407_v23 = vadd.f32 %v816_v21, %v970_v20  ;;  %v471_v24 = vadd.f32 %v832_v22, %v970_v20 }
  0xda   : > { %v398_v25 = vpop.f32.mrf.mxu0  ;;  %v462_v26 = vpop.f32.mrf.mxu1 }
  0xdb   : > { %v527_v27 = vmax.f32 %v407_v23, 0.0  ;;  %v543_v28 = vmax.f32 %v471_v24, 0.0  ;;  %v399_v29 = vadd.f32 %v970_v20, %v398_v25  ;;  %v463_v30 = vadd.f32 %v970_v20, %v462_v26 }
  0xdc   : > { %v817_v31 = vpop.f32.mrf.mxu0  ;;  %v833_v32 = vpop.f32.mrf.mxu1 }
  0xdd   : > { %560 = vst.msk [vmem:[#allocation2 + $0x10] sm:$0xff] %vm557_vm2, %v527_v27  ;;  %576 = vst.msk [vmem:[#allocation2 + $0x90] sm:$0xff] %vm557_vm2, %v543_v28  ;;  %v525_v33 = vmax.f32 %v399_v29, 0.0  ;;  %v541_v34 = vmax.f32 %v463_v30, 0.0  ;;  %v410_v35 = vadd.f32 %v817_v31, %v970_v20  ;;  %v474_v36 = vadd.f32 %v833_v32, %v970_v20 }
  0xde   : > { %v401_v37 = vpop.f32.mrf.mxu0  ;;  %v465_v38 = vpop.f32.mrf.mxu1 }
  0xdf   : > { %558 = vst.msk [vmem:[#allocation2] sm:$0xff] %vm557_vm2, %v525_v33  ;;  %574 = vst.msk [vmem:[#allocation2 + $0x80] sm:$0xff] %vm557_vm2, %v541_v34  ;;  %v528_v39 = vmax.f32 %v410_v35, 0.0  ;;  %v544_v40 = vmax.f32 %v474_v36, 0.0  ;;  %v402_v41 = vadd.f32 %v970_v20, %v401_v37  ;;  %v466_v42 = vadd.f32 %v970_v20, %v465_v38 }
  0xe0   : > { %v820_v43 = vpop.f32.mrf.mxu0  ;;  %v836_v44 = vpop.f32.mrf.mxu1 }
  0xe1   : > { %561 = vst.msk [vmem:[#allocation2 + $0x18] sm:$0xff] %vm557_vm2, %v528_v39  ;;  %577 = vst.msk [vmem:[#allocation2 + $0x98] sm:$0xff] %vm557_vm2, %v544_v40  ;;  %v526_v45 = vmax.f32 %v402_v41, 0.0  ;;  %v542_v46 = vmax.f32 %v466_v42, 0.0  ;;  %v423_v47 = vadd.f32 %v820_v43, %v970_v20  ;;  %v487_v48 = vadd.f32 %v836_v44, %v970_v20 }
  0xe2   : > { %v414_v49 = vpop.f32.mrf.mxu0  ;;  %v478_v50 = vpop.f32.mrf.mxu1 }
  0xe3   : > { %559 = vst.msk [vmem:[#allocation2 + $0x8] sm:$0xff] %vm557_vm2, %v526_v45  ;;  %575 = vst.msk [vmem:[#allocation2 + $0x88] sm:$0xff] %vm557_vm2, %v542_v46  ;;  %v531_v51 = vmax.f32 %v423_v47, 0.0  ;;  %v547_v52 = vmax.f32 %v487_v48, 0.0  ;;  %v415_v53 = vadd.f32 %v970_v20, %v414_v49  ;;  %v479_v54 = vadd.f32 %v970_v20, %v478_v50 }
  0xe4   : > { %v821_v55 = vpop.f32.mrf.mxu0  ;;  %v837_v56 = vpop.f32.mrf.mxu1  ;;  %v591_v3 = vld [vmem:[#allocation2 + $0x10] sm:$0x7f] }
  0xe5   : > { %564 = vst.msk [vmem:[#allocation2 + $0x30] sm:$0xff] %vm557_vm2, %v531_v51  ;;  %580 = vst.msk [vmem:[#allocation2 + $0xb0] sm:$0xff] %vm557_vm2, %v547_v52  ;;  %v529_v57 = vmax.f32 %v415_v53, 0.0  ;;  %v545_v58 = vmax.f32 %v479_v54, 0.0  ;;  %v426_v59 = vadd.f32 %v821_v55, %v970_v20  ;;  %v490_v60 = vadd.f32 %v837_v56, %v970_v20  ;;  %v599_v8 = vld [vmem:[#allocation2 + $0x90] sm:$0x7f] }
  0xe6   : > { %v417_v61 = vpop.f32.mrf.mxu0  ;;  %v481_v62 = vpop.f32.mrf.mxu1  ;;  %v590_v9 = vld [vmem:[#allocation2] sm:$0x7f]  ;;  %v636_v30 = vld [vmem:[#allocation2 + $0x11] sm:$0x7f] }
  0xe7   : > { %562 = vst.msk [vmem:[#allocation2 + $0x20] sm:$0xff] %vm557_vm2, %v529_v57  ;;  %578 = vst.msk [vmem:[#allocation2 + $0xa0] sm:$0xff] %vm557_vm2, %v545_v58  ;;  %v532_v63 = vmax.f32 %v426_v59, 0.0  ;;  %v548_v0 = vmax.f32 %v490_v60, 0.0  ;;  %v418_v1 = vadd.f32 %v970_v20, %v417_v61  ;;  %v482_v2 = vadd.f32 %v970_v20, %v481_v62  ;;  %v598_v12 = vld [vmem:[#allocation2 + $0x80] sm:$0x7f] }
  0xe8   : > { %v606_v4 = vld [vmem:[#allocation2 + $0x18] sm:$0x7f]  ;;  %v824_v6 = vpop.f32.mrf.mxu0  ;;  %v840_v7 = vpop.f32.mrf.mxu1  ;;  %v635_v24 = vld [vmem:[#allocation2 + $0x1] sm:$0x7f]  ;;  %v644_v31 = vld [vmem:[#allocation2 + $0x91] sm:$0x7f] }
  0xe9   : > { %v614_v5 = vld [vmem:[#allocation2 + $0x98] sm:$0x7f]  ;;  %565 = vst.msk [vmem:[#allocation2 + $0x38] sm:$0xff] %vm557_vm2, %v532_v63  ;;  %581 = vst.msk [vmem:[#allocation2 + $0xb8] sm:$0xff] %vm557_vm2, %v548_v0  ;;  %v530_v10 = vmax.f32 %v418_v1, 0.0  ;;  %v546_v11 = vmax.f32 %v482_v2, 0.0  ;;  %v621_v13 = vmax.f32 %v591_v3, %v606_v4  ;;  %v439_v17 = vadd.f32 %v824_v6, %v970_v20 }
  0xea   : > { %v629_v14 = vmax.f32 %v599_v8, %v614_v5  ;;  %v605_v15 = vld [vmem:[#allocation2 + $0x8] sm:$0x7f]  ;;  %v430_v18 = vpop.f32.mrf.mxu0  ;;  %v494_v19 = vpop.f32.mrf.mxu1  ;;  %v503_v23 = vadd.f32 %v840_v7, %v970_v20  ;;  %v643_v25 = vld [vmem:[#allocation2 + $0x81] sm:$0x7f] }
  0xeb   : > { %v613_v16 = vld [vmem:[#allocation2 + $0x88] sm:$0x7f]  ;;  %v620_v21 = vmax.f32 %v590_v9, %v605_v15  ;;  %563 = vst.msk [vmem:[#allocation2 + $0x28] sm:$0xff] %vm557_vm2, %v530_v10  ;;  %579 = vst.msk [vmem:[#allocation2 + $0xa8] sm:$0xff] %vm557_vm2, %v546_v11  ;;  %v431_v26 = vadd.f32 %v970_v20, %v430_v18  ;;  %v495_v27 = vadd.f32 %v970_v20, %v494_v19  ;;  %v535_v34 = vmax.f32 %v439_v17, 0.0 }
  0xec   : > { %v628_v22 = vmax.f32 %v598_v12, %v613_v16  ;;  %v825_v28 = vpop.f32.mrf.mxu0  ;;  %v841_v29 = vpop.f32.mrf.mxu1  ;;  %v1009_v35 = vmax.f32 %v621_v13, %v636_v30  ;;  %v659_v36 = vmax.f32 %v629_v14, %v644_v31  ;;  %v551_v42 = vmax.f32 %v503_v23, 0.0  ;;  %v593_v45 = vld [vmem:[#allocation2 + $0x30] sm:$0x7f] }
  0xed   : > { %v650_v32 = vmax.f32 %v620_v21, %v635_v24  ;;  %v442_v37 = vadd.f32 %v825_v28, %v970_v20  ;;  %v506_v38 = vadd.f32 %v841_v29, %v970_v20  ;;  %568 = vst.msk [vmem:[#allocation2 + $0x50] sm:$0xff] %vm557_vm2, %v535_v34  ;;  %v533_v43 = vmax.f32 %v431_v26, 0.0  ;;  %v601_v2 = vld [vmem:[#allocation2 + $0xb0] sm:$0x7f] }
  0xee   : > { %v658_v33 = vmax.f32 %v628_v22, %v643_v25  ;;  %v433_v39 = vpop.f32.mrf.mxu0  ;;  %v497_v40 = vpop.f32.mrf.mxu1  ;;  %v549_v44 = vmax.f32 %v495_v27, 0.0  ;;  %v592_v54 = vld [vmem:[#allocation2 + $0x20] sm:$0x7f]  ;;  %584 = vst.msk [vmem:[#allocation2 + $0xd0] sm:$0xff] %vm557_vm2, %v551_v42  ;;  %v666_v1 = vmax.f32 %v1009_v35, %v659_v36  ;;  %v638_v12 = vld [vmem:[#allocation2 + $0x31] sm:$0x7f] }
  0xef   : > { %v536_v47 = vmax.f32 %v442_v37, 0.0  ;;  %v552_v48 = vmax.f32 %v506_v38, 0.0  ;;  %v434_v49 = vadd.f32 %v970_v20, %v433_v39  ;;  %v498_v50 = vadd.f32 %v970_v20, %v497_v40  ;;  %v600_v55 = vld [vmem:[#allocation2 + $0xa0] sm:$0x7f]  ;;  %566 = vst.msk [vmem:[#allocation2 + $0x40] sm:$0xff] %vm557_vm2, %v533_v43 }
  0xf0   : > { %v665_v41 = vmax.f32 %v650_v32, %v658_v33  ;;  %v608_v46 = vld [vmem:[#allocation2 + $0x38] sm:$0x7f]  ;;  %v828_v51 = vpop.f32.mrf.mxu0  ;;  %v844_v52 = vpop.f32.mrf.mxu1  ;;  %582 = vst.msk [vmem:[#allocation2 + $0xc0] sm:$0xff] %vm557_vm2, %v549_v44  ;;  %v637_v5 = vld [vmem:[#allocation2 + $0x21] sm:$0x7f] }
  0xf1   : > { %v616_v56 = vld [vmem:[#allocation2 + $0xb8] sm:$0x7f]  ;;  %v455_v57 = vadd.f32 %v828_v51, %v970_v20  ;;  %v623_v58 = vmax.f32 %v593_v45, %v608_v46  ;;  %569 = vst.msk [vmem:[#allocation2 + $0x58] sm:$0xff] %vm557_vm2, %v536_v47  ;;  %585 = vst.msk [vmem:[#allocation2 + $0xd8] sm:$0xff] %vm557_vm2, %v552_v48  ;;  %v534_v61 = vmax.f32 %v434_v49, 0.0  ;;  %v550_v62 = vmax.f32 %v498_v50, 0.0 }
  0xf2   : > { %v672_v53 = vmax.f32 %v665_v41, %v1009_v35  ;;  %v607_v59 = vld [vmem:[#allocation2 + $0x28] sm:$0x7f]  ;;  %v446_v63 = vpop.f32.mrf.mxu0  ;;  %v510_v0 = vpop.f32.mrf.mxu1  ;;  %v645_v6 = vld [vmem:[#allocation2 + $0xa1] sm:$0x7f]  ;;  %v631_v13 = vmax.f32 %v601_v2, %v616_v56  ;;  %v646_v27 = vld [vmem:[#allocation2 + $0xb1] sm:$0x7f] }
  0xf3   : > { %v615_v60 = vld [vmem:[#allocation2 + $0xa8] sm:$0x7f]  ;;  %v622_v3 = vmax.f32 %v592_v54, %v607_v59  ;;  %567 = vst.msk [vmem:[#allocation2 + $0x48] sm:$0xff] %vm557_vm2, %v534_v61  ;;  %583 = vst.msk [vmem:[#allocation2 + $0xc8] sm:$0xff] %vm557_vm2, %v550_v62  ;;  %v539_v7 = vmax.f32 %v455_v57, 0.0  ;;  %v447_v8 = vadd.f32 %v970_v20, %v446_v63  ;;  %v511_v9 = vadd.f32 %v970_v20, %v510_v0 }
  0xf4   : > { %680 = vst.msk [vmem:[%s1017_s29] sm:$0x7f] %vm679_vm3, %v672_v53  ;;  %v630_v4 = vmax.f32 %v600_v55, %v615_v60  ;;  %v829_v10 = vpop.f32.mrf.mxu0  ;;  %v845_v11 = vpop.f32.mrf.mxu1  ;;  %v653_v17 = vmax.f32 %v623_v58, %v638_v12  ;;  %v595_v30 = vld [vmem:[#allocation2 + $0x50] sm:$0x7f]  ;;  %v661_v33 = vmax.f32 %v631_v13, %v646_v27 }
  0xf5   : > { %v652_v14 = vmax.f32 %v622_v3, %v637_v5  ;;  %v458_v16 = vadd.f32 %v829_v10, %v970_v20  ;;  %572 = vst.msk [vmem:[#allocation2 + $0x70] sm:$0xff] %vm557_vm2, %v539_v7  ;;  %v537_v18 = vmax.f32 %v447_v8, 0.0  ;;  %v553_v19 = vmax.f32 %v511_v9, 0.0  ;;  %v603_v42 = vld [vmem:[#allocation2 + $0xd0] sm:$0x7f] }
  0xf6   : > { %v660_v15 = vmax.f32 %v630_v4, %v645_v6  ;;  %v449_v21 = vpop.f32.mrf.mxu0  ;;  %v513_v22 = vpop.f32.mrf.mxu1  ;;  %v594_v31 = vld [vmem:[#allocation2 + $0x40] sm:$0x7f]  ;;  %v668_v45 = vmax.f32 %v653_v17, %v661_v33  ;;  %v640_v49 = vld [vmem:[#allocation2 + $0x51] sm:$0x7f] }
  0xf7   : > { %v673_v23 = vmax.f32 %v666_v1, %v652_v14  ;;  %v540_v25 = vmax.f32 %v458_v16, 0.0  ;;  %v450_v26 = vadd.f32 %v970_v20, %v449_v21  ;;  %570 = vst.msk [vmem:[#allocation2 + $0x60] sm:$0xff] %vm557_vm2, %v537_v18  ;;  %586 = vst.msk [vmem:[#allocation2 + $0xe0] sm:$0xff] %vm557_vm2, %v553_v19  ;;  %v514_v28 = vadd.f32 %v970_v20, %v513_v22  ;;  %v602_v32 = vld [vmem:[#allocation2 + $0xc0] sm:$0x7f] }
  0xf8   : > { %v667_v24 = vmax.f32 %v652_v14, %v660_v15  ;;  %v610_v34 = vld [vmem:[#allocation2 + $0x58] sm:$0x7f]  ;;  %v639_v43 = vld [vmem:[#allocation2 + $0x41] sm:$0x7f]  ;;  %v648_v53 = vld [vmem:[#allocation2 + $0xd1] sm:$0x7f] }
  0xf9   : > { %681 = vst.msk [vmem:[%s1017_s29 + $0x8] sm:$0x7f] %vm679_vm3, %v673_v23  ;;  %v618_v35 = vld [vmem:[#allocation2 + $0xd8] sm:$0x7f]  ;;  %v538_v36 = vmax.f32 %v450_v26, 0.0  ;;  %v554_v39 = vmax.f32 %v514_v28, 0.0  ;;  %v625_v40 = vmax.f32 %v595_v30, %v610_v34 }
  0xfa   : > { %v674_v29 = vmax.f32 %v667_v24, %v653_v17  ;;  %573 = vst.msk [vmem:[#allocation2 + $0x78] sm:$0xff] %vm557_vm2, %v540_v25  ;;  %v609_v37 = vld [vmem:[#allocation2 + $0x48] sm:$0x7f]  ;;  %v647_v44 = vld [vmem:[#allocation2 + $0xc1] sm:$0x7f]  ;;  %v633_v46 = vmax.f32 %v603_v42, %v618_v35 }
  0xfb   : > { %v617_v38 = vld [vmem:[#allocation2 + $0xc8] sm:$0x7f]  ;;  %v624_v41 = vmax.f32 %v594_v31, %v609_v37  ;;  %571 = vst.msk [vmem:[#allocation2 + $0x68] sm:$0xff] %vm557_vm2, %v538_v36  ;;  %587 = vst.msk [vmem:[#allocation2 + $0xe8] sm:$0xff] %vm557_vm2, %v554_v39  ;;  %v655_v50 = vmax.f32 %v625_v40, %v640_v49 }
  0xfc   : > { %682 = vst.msk [vmem:[%s1017_s29 + $0x10] sm:$0x7f] %vm679_vm3, %v674_v29  ;;  %v632_v20 = vmax.f32 %v602_v32, %v617_v38  ;;  %v663_v54 = vmax.f32 %v633_v46, %v648_v53  ;;  %v597_v59 = vld [vmem:[#allocation2 + $0x70] sm:$0x7f] }
  0xfd   : > { %v654_v47 = vmax.f32 %v624_v41, %v639_v43  ;;  %v642_v6 = vld [vmem:[#allocation2 + $0x71] sm:$0x7f] }
  0xfe   : > { %v662_v48 = vmax.f32 %v632_v20, %v647_v44  ;;  %v596_v57 = vld [vmem:[#allocation2 + $0x60] sm:$0x7f]  ;;  %v670_v2 = vmax.f32 %v655_v50, %v663_v54 }
  0xff   : > { %v675_v51 = vmax.f32 %v668_v45, %v654_v47  ;;  %v604_v60 = vld [vmem:[#allocation2 + $0xe0] sm:$0x7f] }
 0x100   : > { %v669_v52 = vmax.f32 %v654_v47, %v662_v48  ;;  %v641_v63 = vld [vmem:[#allocation2 + $0x61] sm:$0x7f] }
 0x101   : > { %683 = vst.msk [vmem:[%s1017_s29 + $0x18] sm:$0x7f] %vm679_vm3, %v675_v51  ;;  %v612_v56 = vld [vmem:[#allocation2 + $0x78] sm:$0x7f]  ;;  %v649_v3 = vld [vmem:[#allocation2 + $0xe1] sm:$0x7f] }
 0x102   : > { %v676_v55 = vmax.f32 %v669_v52, %v655_v50  ;;  %v611_v58 = vld [vmem:[#allocation2 + $0x68] sm:$0x7f]  ;;  %v627_v0 = vmax.f32 %v597_v59, %v612_v56 }
 0x103   : > { %v626_v61 = vmax.f32 %v596_v57, %v611_v58  ;;  %v619_v62 = vld [vmem:[#allocation2 + $0xe8] sm:$0x7f] }
 0x104   : > { %684 = vst.msk [vmem:[%s1017_s29 + $0x20] sm:$0x7f] %vm679_vm3, %v676_v55  ;;  %v634_v1 = vmax.f32 %v604_v60, %v619_v62  ;;  %v657_v8 = vmax.f32 %v627_v0, %v642_v6 }
 0x105   : > { %v656_v4 = vmax.f32 %v626_v61, %v641_v63 }
 0x106   : > { %v664_v5 = vmax.f32 %v634_v1, %v649_v3 }
 0x107   : > { %v677_v7 = vmax.f32 %v670_v2, %v656_v4 }
 0x108   : > { %v671_v9 = vmax.f32 %v656_v4, %v664_v5 }
 0x109   : > { %685 = vst.msk [vmem:[%s1017_s29 + $0x28] sm:$0x7f] %vm679_vm3, %v677_v7 }
 0x10a   : > { %v678_v10 = vmax.f32 %v671_v9, %v657_v8 }
 0x10c   : > { %686 = vst.msk [vmem:[%s1017_s29 + $0x30] sm:$0x7f] %vm679_vm3, %v678_v10 }
 0x10d PF: > { %s13_s12 = sadd.s32 1, %s888_s12  }
 0x10e   : > { %p10_p4 = scmp.ge.s32.totalorder %s13_s12, 4  }
 0x110   :  { %12 = sbr.rel (!%p10_p4) target bundleno = 1 (0x1), region = 62 }

</bundles_post_ra>
